<compile_context>
chip_gen: v7x
topology: tpu7x:2x2x1
jax: 0.10.0
libtpu: 0.0.40
codegen_flags: <defaults>
</compile_context>

<pallas_src>
import functools

import jax
import jax.numpy as jnp
from jax.experimental import pallas as pl
from jax.experimental.pallas import tpu as pltpu


def _round_up(x, m):
    return ((x + m - 1) // m) * m


def _jcloss_kernel(x_ref, out_ref, *, single_step):
    """One tile of the diagonal IoU loss.

    x_ref:   (2, 4, S_tile, 128) f32 -- {a,b} x {x1,y1,x2,y2} coord planes.
    out_ref: (1, 8, 128)         f32 -- this core's partial sum; resident in
                                        VMEM across the reduction grid axis.
    """
    # Each coordinate plane is a dense (S_tile, 128) slab (full vregs).
    ax1 = x_ref[0, 0]
    ay1 = x_ref[0, 1]
    ax2 = x_ref[0, 2]
    ay2 = x_ref[0, 3]
    bx1 = x_ref[1, 0]
    by1 = x_ref[1, 1]
    bx2 = x_ref[1, 2]
    by2 = x_ref[1, 3]

    # Elementwise (diagonal) intersection / union / IoU.
    iw = jnp.maximum(jnp.minimum(ax2, bx2) - jnp.maximum(ax1, bx1), 0.0)
    ih = jnp.maximum(jnp.minimum(ay2, by2) - jnp.maximum(ay1, by1), 0.0)
    inter = iw * ih
    area_a = (ax2 - ax1) * (ay2 - ay1)
    area_b = (bx2 - bx1) * (by2 - by1)
    union = area_a + area_b - inter

    # Full-precision reciprocal (EUP path); kernel stays HBM-bound anyway.
    iou = inter * pl.reciprocal(union, approx=False)
    loss = jnp.clip(1.0 - iou, 0.0, 1.0)  # padded lanes: iou == 1 -> loss == 0

    # Reduce only across vreg boundaries (pure VPU adds, no XLU):
    # (S_tile, 128) -> (1, 8, 128).
    psum = jnp.sum(loss.reshape(1, -1, 8, 128), axis=1)

    if single_step:
        # Each output block is visited exactly once: direct store, no phases.
        out_ref[...] = psum
    else:
        @pl.when(pl.program_id(1) == 0)
        def _init():
            out_ref[...] = jnp.zeros_like(out_ref)

        out_ref[...] += psum


def jc_loss(box_a, box_b, *, max_tile_rows=1024):
    """JCLoss forward. box_a: (A, 4), box_b: (B, 4) -> scalar f32.

    max_tile_rows: sublane rows (of 128 boxes each) per grid step.  The
    default 1024 rows = 128K boxes = 4 MiB input block per step (8 MiB
    double-buffered), comfortably inside every generation's VMEM budget
    (including v7x's 32 MiB scoped default).
    """
    A = box_a.shape[0]
    B = box_b.shape[0]
    n = min(A, B)
    if n == 0:
        raise ValueError("jc_loss requires at least one box in each input.")
    max_tile_rows = max(8, _round_up(max_tile_rows, 8))

    # Tiling: pad boxes to a multiple of 1024 (= 8 sublanes x 128 lanes) so the
    # sublane-row count S is a multiple of 8, then split S into tiles and
    # (when multi-tile) across 2 cores for v7x megacore.
    s_rows = _round_up(n, 8 * 128) // 128          # multiple of 8
    s_tile = min(max_tile_rows, s_rows)
    num_tiles = _round_up(s_rows, s_tile) // s_tile
    cores = 2 if num_tiles > 1 else 1              # 2-TC split (no-op on v5e/v6e)
    tiles_per_core = -(-num_tiles // cores)
    S = cores * tiles_per_core * s_tile
    n_pad = S * 128

    # Host-side layout: slice to the diagonal length, pad with the unit box
    # [0,0,1,1] (contributes exactly 0 loss), and pack both box sets into one
    # SoA array (2, 4, S, 128).  XLA fuses this into a single layout pass.
    # TODO(synk): if the upstream producer can emit this SoA layout directly,
    # this transpose/pad pass disappears entirely.
    a = jnp.asarray(box_a, jnp.float32)[:n]
    b = jnp.asarray(box_b, jnp.float32)[:n]
    pad = n_pad - n
    if pad:
        unit = jnp.broadcast_to(
            jnp.array([0.0, 0.0, 1.0, 1.0], jnp.float32), (pad, 4))
        a = jnp.concatenate([a, unit], axis=0)
        b = jnp.concatenate([b, unit], axis=0)
    x = jnp.stack([a, b], axis=0).transpose(0, 2, 1).reshape(2, 4, S, 128)

    kernel = functools.partial(
        _jcloss_kernel, single_step=(tiles_per_core == 1))

    partial_sums = pl.pallas_call(
        kernel,
        out_shape=jax.ShapeDtypeStruct((cores, 8, 128), jnp.float32),
        grid=(cores, tiles_per_core),
        in_specs=[
            pl.BlockSpec((2, 4, s_tile, 128),
                         lambda c, i: (0, 0, c * tiles_per_core + i, 0)),
        ],
        out_specs=pl.BlockSpec((1, 8, 128), lambda c, i: (c, 0, 0)),
        compiler_params=pltpu.CompilerParams(
            dimension_semantics=("parallel", "arbitrary")),
    )(x)

    # Final cross-lane reduce + mean normalization: one tiny fused XLA op.
    # Keeping 1/n out of the kernel body avoids baking it into the compile.
    return jnp.sum(partial_sums) / jnp.float32(n)


def _reference_jc_loss(box_a, box_b):
    """Pure-JAX reference mirroring the PyTorch forward exactly."""
    box_a = jnp.asarray(box_a, jnp.float32)
    box_b = jnp.asarray(box_b, jnp.float32)
    A = box_a.shape[0]
    B = box_b.shape[0]
    max_xy = jnp.minimum(box_a[:, None, 2:], box_b[None, :, 2:])
    min_xy = jnp.maximum(box_a[:, None, :2], box_b[None, :, :2])
    inter = jnp.maximum(max_xy - min_xy, 0.0)
    inter = inter[:, :, 0] * inter[:, :, 1]
    area_a = ((box_a[:, 2] - box_a[:, 0]) * (box_a[:, 3] - box_a[:, 1]))[:, None]
    area_b = ((box_b[:, 2] - box_b[:, 0]) * (box_b[:, 3] - box_b[:, 1]))[None, :]
    union = area_a + area_b - inter
    result = inter / union
    n = min(A, B)
    diag = jnp.diagonal(result)[:n]
    return jnp.mean(jnp.clip(1.0 - diag, 0.0, 1.0))


def _random_boxes(key, n):
    k1, k2 = jax.random.split(key)
    xy = jax.random.uniform(k1, (n, 2), jnp.float32, 0.0, 10.0)
    wh = jax.random.uniform(k2, (n, 2), jnp.float32, 1.0, 5.0)
    return jnp.concatenate([xy, xy + wh], axis=1)


if __name__ == "__main__":
    key = jax.random.PRNGKey(0)
    cases = [
        (8, 8, {}),                           # single-tile fast path
        (8, 12, {}),                          # A != B -> diagonal length min(A, B)
        (1000, 1000, {}),                     # typical detection box count
        (3000, 3000, {"max_tile_rows": 8}),   # multi-tile grid + 2-core split
    ]
    ok = True
    for idx, (A, B, kwargs) in enumerate(cases):
        ka, kb = jax.random.split(jax.random.fold_in(key, idx))
        box_a = _random_boxes(ka, A)
        box_b = _random_boxes(kb, B)

        loss = jc_loss(box_a, box_b, **kwargs)
        jax.block_until_ready(loss)

        ref = _reference_jc_loss(box_a, box_b)
        if not jnp.allclose(loss, ref, atol=1e-5, rtol=1e-5):
            ok = False
            print(f"MISMATCH A={A} B={B}: kernel={loss} ref={ref}")

    if ok:
        print("KERNEL_OK")
</pallas_src>

<mosaic_0001>
module attributes {stable_mosaic.version = 11 : i64} {
  func.func @_jcloss_kernel(%arg0: i32, %arg1: i32, %arg2: memref<2x4x8x128xf32, #tpu.memory_space<vmem>>, %arg3: memref<1x8x128xf32, #tpu.memory_space<vmem>>) attributes {dimension_semantics = [#tpu.dimension_semantics<parallel>, #tpu.dimension_semantics<arbitrary>], iteration_bounds = array<i64: 1, 1>, scalar_prefetch = 0 : i64, scratch_operands = 0 : i64, tpu.core_type = #tpu.core_type<tc>, window_params = [{transform_indices = @transform_0, window_bounds = array<i64: 2, 4, 8, 128>}, {transform_indices = @transform_1, window_bounds = array<i64: 1, 8, 128>}]} {
    %c0 = arith.constant 0 : index
    %c0_0 = arith.constant 0 : index
    %c0_1 = arith.constant 0 : index
    %c0_2 = arith.constant 0 : index
    %0 = vector.load %arg2[%c0, %c0_0, %c0_1, %c0_2] : memref<2x4x8x128xf32, #tpu.memory_space<vmem>>, vector<1x1x8x128xf32>
    %1 = vector.shape_cast %0 : vector<1x1x8x128xf32> to vector<8x128xf32>
    %c0_3 = arith.constant 0 : index
    %c1 = arith.constant 1 : index
    %c0_4 = arith.constant 0 : index
    %c0_5 = arith.constant 0 : index
    %2 = vector.load %arg2[%c0_3, %c1, %c0_4, %c0_5] : memref<2x4x8x128xf32, #tpu.memory_space<vmem>>, vector<1x1x8x128xf32>
    %3 = vector.shape_cast %2 : vector<1x1x8x128xf32> to vector<8x128xf32>
    %c0_6 = arith.constant 0 : index
    %c2 = arith.constant 2 : index
    %c0_7 = arith.constant 0 : index
    %c0_8 = arith.constant 0 : index
    %4 = vector.load %arg2[%c0_6, %c2, %c0_7, %c0_8] : memref<2x4x8x128xf32, #tpu.memory_space<vmem>>, vector<1x1x8x128xf32>
    %5 = vector.shape_cast %4 : vector<1x1x8x128xf32> to vector<8x128xf32>
    %c0_9 = arith.constant 0 : index
    %c3 = arith.constant 3 : index
    %c0_10 = arith.constant 0 : index
    %c0_11 = arith.constant 0 : index
    %6 = vector.load %arg2[%c0_9, %c3, %c0_10, %c0_11] : memref<2x4x8x128xf32, #tpu.memory_space<vmem>>, vector<1x1x8x128xf32>
    %7 = vector.shape_cast %6 : vector<1x1x8x128xf32> to vector<8x128xf32>
    %c1_12 = arith.constant 1 : index
    %c0_13 = arith.constant 0 : index
    %c0_14 = arith.constant 0 : index
    %c0_15 = arith.constant 0 : index
    %8 = vector.load %arg2[%c1_12, %c0_13, %c0_14, %c0_15] : memref<2x4x8x128xf32, #tpu.memory_space<vmem>>, vector<1x1x8x128xf32>
    %9 = vector.shape_cast %8 : vector<1x1x8x128xf32> to vector<8x128xf32>
    %c1_16 = arith.constant 1 : index
    %c1_17 = arith.constant 1 : index
    %c0_18 = arith.constant 0 : index
    %c0_19 = arith.constant 0 : index
    %10 = vector.load %arg2[%c1_16, %c1_17, %c0_18, %c0_19] : memref<2x4x8x128xf32, #tpu.memory_space<vmem>>, vector<1x1x8x128xf32>
    %11 = vector.shape_cast %10 : vector<1x1x8x128xf32> to vector<8x128xf32>
    %c1_20 = arith.constant 1 : index
    %c2_21 = arith.constant 2 : index
    %c0_22 = arith.constant 0 : index
    %c0_23 = arith.constant 0 : index
    %12 = vector.load %arg2[%c1_20, %c2_21, %c0_22, %c0_23] : memref<2x4x8x128xf32, #tpu.memory_space<vmem>>, vector<1x1x8x128xf32>
    %13 = vector.shape_cast %12 : vector<1x1x8x128xf32> to vector<8x128xf32>
    %c1_24 = arith.constant 1 : index
    %c3_25 = arith.constant 3 : index
    %c0_26 = arith.constant 0 : index
    %c0_27 = arith.constant 0 : index
    %14 = vector.load %arg2[%c1_24, %c3_25, %c0_26, %c0_27] : memref<2x4x8x128xf32, #tpu.memory_space<vmem>>, vector<1x1x8x128xf32>
    %15 = vector.shape_cast %14 : vector<1x1x8x128xf32> to vector<8x128xf32>
    %16 = arith.minimumf %5, %13 : vector<8x128xf32>
    %17 = arith.maximumf %1, %9 : vector<8x128xf32>
    %18 = arith.subf %16, %17 : vector<8x128xf32>
    %cst = arith.constant 0.000000e+00 : f32
    %19 = vector.broadcast %cst : f32 to vector<8x128xf32>
    %20 = arith.maximumf %18, %19 : vector<8x128xf32>
    %21 = arith.minimumf %7, %15 : vector<8x128xf32>
    %22 = arith.maximumf %3, %11 : vector<8x128xf32>
    %23 = arith.subf %21, %22 : vector<8x128xf32>
    %cst_28 = arith.constant 0.000000e+00 : f32
    %24 = vector.broadcast %cst_28 : f32 to vector<8x128xf32>
    %25 = arith.maximumf %23, %24 : vector<8x128xf32>
    %26 = arith.mulf %20, %25 : vector<8x128xf32>
    %27 = arith.subf %5, %1 : vector<8x128xf32>
    %28 = arith.subf %7, %3 : vector<8x128xf32>
    %29 = arith.mulf %27, %28 : vector<8x128xf32>
    %30 = arith.subf %13, %9 : vector<8x128xf32>
    %31 = arith.subf %15, %11 : vector<8x128xf32>
    %32 = arith.mulf %30, %31 : vector<8x128xf32>
    %33 = arith.addf %29, %32 : vector<8x128xf32>
    %34 = arith.subf %33, %26 : vector<8x128xf32>
    %35 = tpu.reciprocal %34 : vector<8x128xf32> -> vector<8x128xf32>
    %36 = arith.mulf %26, %35 : vector<8x128xf32>
    %cst_29 = arith.constant 1.000000e+00 : f32
    %37 = vector.broadcast %cst_29 : f32 to vector<8x128xf32>
    %38 = arith.subf %37, %36 : vector<8x128xf32>
    %cst_30 = arith.constant 0.000000e+00 : f32
    %cst_31 = arith.constant 1.000000e+00 : f32
    %39 = vector.broadcast %cst_30 : f32 to vector<8x128xf32>
    %40 = arith.maximumf %39, %38 : vector<8x128xf32>
    %41 = vector.broadcast %cst_31 : f32 to vector<8x128xf32>
    %42 = arith.minimumf %41, %40 : vector<8x128xf32>
    %43 = vector.shape_cast %42 : vector<8x128xf32> to vector<1x1x8x128xf32>
    %cst_32 = arith.constant dense<0.000000e+00> : vector<1x8x128xf32>
    %44 = vector.multi_reduction <add>, %43, %cst_32 [1] : vector<1x1x8x128xf32> to vector<1x8x128xf32>
    %c0_33 = arith.constant 0 : index
    %c0_34 = arith.constant 0 : index
    %c0_35 = arith.constant 0 : index
    %45 = vector.load %arg3[%c0_33, %c0_34, %c0_35] : memref<1x8x128xf32, #tpu.memory_space<vmem>>, vector<1x8x128xf32>
    tpu.vector_store %arg3[%c0_33, %c0_34, %c0_35], %44 {strides = array<i32>} : memref<1x8x128xf32, #tpu.memory_space<vmem>>, vector<1x8x128xf32>,
    return
  }
  func.func @transform_0(%arg0: i32, %arg1: i32) -> (i32, i32, i32, i32) {
    %c1_i32 = arith.constant 1 : i32
    %0 = arith.muli %arg0, %c1_i32 : i32
    %1 = arith.addi %0, %arg1 : i32
    %c0_i32 = arith.constant 0 : i32
    %c0_i32_0 = arith.constant 0 : i32
    %c0_i32_1 = arith.constant 0 : i32
    %c0_i32_2 = arith.constant 0 : i32
    return %c0_i32, %c0_i32_0, %1, %c0_i32_1 : i32, i32, i32, i32
  }
  func.func @transform_1(%arg0: i32, %arg1: i32) -> (i32, i32, i32) {
    %c0_i32 = arith.constant 0 : i32
    %c0_i32_0 = arith.constant 0 : i32
    %c0_i32_1 = arith.constant 0 : i32
    return %arg0, %c0_i32, %c0_i32_0 : i32, i32, i32
  }
}

</mosaic_0001>

<bundles_post_ra>
// kernel: tpu_custom_call.1
= control target key start
LH: loop header
LB: loop body
LE: loop exit
PB: predicated region body
PF: predicated region fallthrough
CT: control target
= control target key end

     0   :  { %6 = vsyncpa [#allocation3], 0  ;;  %s173_s0 = inlined_call_operand.hbm [shape: f32[2,4,8,128], index: 0, kind: input, shape index: {}]   ;;  %s174_s1 = inlined_call_operand.hbm [shape: f32[1,8,128], index: 1, kind: output, shape index: {}]  }
   0x1   :  { %7 = vsyncpa [#allocation4], 0  ;;  %s135_s6 = smov [#allocation2]   ;;  %s87_s10 = scalar_lea.hbm %s173_s0, 1024 }
   0x2   :  { %s16_s7 = sshll.u32 %s135_s6, 4  ;;  %p88_p0 = scmp.ne.s32.totalorder %s173_s0, %s87_s10  ;;  %s17_s7 = int_to_ptr.vmem [resolvable:$true] %s16_s7 }
   0x3   :  { %p91_p1 = scmp.lt.u32.totalorder %s87_s10, %s173_s0 }
   0x5   :  { %p93_p2 = pnand %p91_p1, %p88_p0 }
   0x7   :  { %96 = shalt.err (!%p93_p2)
}
   0x8   :  { %s97_s15 = scalar_lea.vmem %s17_s7, 1024  ;;  %p102_p4 = scmp.lt.s32.totalorder %s17_s7, %s17_s7 }
   0x9   :  { %p98_p3 = scmp.ne.s32.totalorder %s17_s7, %s97_s15  ;;  %p103_p5 = scmp.lt.s32.totalorder %s97_s15, %s97_s15 }
   0xb   :  { %p104_p6 = por %p103_p5, %p102_p4 }
   0xd   :  { %p105_p7 = pnand %p104_p6, %p98_p3 }
   0xf   :  { %108 = shalt.err (!%p105_p7)
}
  0x10   :  { %s136_s16 = smov 128   ;;  %s137_s17 = smov 8  }
  0x11   :  { %22 = dma.hbm_to_vmem [thread:$0]  %s173_s0, 1024, %s17_s7, [#allocation3], %s136_s16, %s136_s16, %s137_s17  }
  0x12   :  { %131 = dma.done.wait [#allocation3], 1024  }
  0x13   :  { %132 = vsyncadd [#allocation3], 4294966272  ;;  %v27_v0 = vld [vmem:[#allocation2] sm:$0xff]  ;;  %v29_v1 = vld [vmem:[#allocation2 + $0x8] sm:$0xff]  ;;  %s138_s0 = smov [#allocation5]  }
  0x14   :  { %v31_v2 = vld [vmem:[#allocation2 + $0x10] sm:$0xff]  ;;  %v33_v3 = vld [vmem:[#allocation2 + $0x18] sm:$0xff]  ;;  %v35_v4 = vld [vmem:[#allocation2 + $0x20] sm:$0xff]  ;;  %s72_s20 = sshll.u32 %s138_s0, 4  ;;  %s73_s20 = int_to_ptr.vmem [resolvable:$true] %s72_s20 }
  0x15   :  { %v37_v5 = vld [vmem:[#allocation2 + $0x28] sm:$0xff]  ;;  %v51_v6 = vsub.f32 %v31_v2, %v27_v0  ;;  %v39_v7 = vld [vmem:[#allocation2 + $0x30] sm:$0xff]  ;;  %v41_v8 = vld [vmem:[#allocation2 + $0x38] sm:$0xff]  ;;  %v43_v9 = vmax.f32 %v27_v0, %v35_v4  ;;  %v52_v11 = vsub.f32 %v33_v3, %v29_v1  ;;  %s109_s21 = scalar_lea.vmem %s73_s20, 128  ;;  %p114_p9 = scmp.lt.s32.totalorder %s73_s20, %s73_s20 }
  0x16   :  { %v47_v10 = vmax.f32 %v29_v1, %v37_v5  ;;  %v42_v12 = vmin.f32 %v31_v2, %v39_v7  ;;  %v46_v13 = vmin.f32 %v33_v3, %v41_v8  ;;  %v54_v14 = vsub.f32 %v39_v7, %v35_v4  ;;  %p110_p8 = scmp.ne.s32.totalorder %s73_s20, %s109_s21  ;;  %p115_p10 = scmp.lt.s32.totalorder %s109_s21, %s109_s21 }
  0x17   :  { %v55_v15 = vsub.f32 %v41_v8, %v37_v5  ;;  %v53_v16 = vmul.f32 %v52_v11, %v51_v6 }
  0x18   :  { %v44_v17 = vsub.f32 %v42_v12, %v43_v9  ;;  %v48_v18 = vsub.f32 %v46_v13, %v47_v10  ;;  %p116_p11 = por %p115_p10, %p114_p9 }
  0x19   :  { %v56_v19 = vmul.f32 %v55_v15, %v54_v14 }
  0x1a   :  { %v45_v20 = vmax.f32 %v44_v17, 0.0  ;;  %v49_v21 = vmax.f32 %v48_v18, 0.0  ;;  %p117_p12 = pnand %p116_p11, %p110_p8 }
  0x1b   :  { %v57_v22 = vadd.f32 %v56_v19, %v53_v16 }
  0x1c   :  { %v50_v23 = vmul.f32 %v49_v21, %v45_v20 }
  0x1e   :  { %v58_v24 = vsub.f32 %v57_v22, %v50_v23 }
  0x20   :  { %85 = vrcp.f32 %v58_v24 }
  0x2a   :  { %v86_v25 = vpop.eup %85 }
  0x2b   :  { %v60_v26 = vmul.f32 %v86_v25, %v50_v23 }
  0x2d   :  { %v61_v27 = vsub.f32 1.0, %v60_v26 }
  0x2f   :  { %v62_v28 = vmax.f32 %v61_v27, 0.0 }
  0x31   :  { %v63_v29 = vmin.f32 %v62_v28, 1.0 }
  0x33   :  { %65 = vst [vmem:[#allocation5] sm:$0xff] %v63_v29 }
  0x34   :  { %120 = shalt.err (!%p117_p12)
}
  0x35   :  { %s121_s24 = scalar_lea.hbm %s174_s1, 128 }
  0x36   :  { %p122_p13 = scmp.ne.s32.totalorder %s174_s1, %s121_s24  ;;  %p125_p0 = scmp.lt.u32.totalorder %s121_s24, %s174_s1 }
  0x38   :  { %p127_p1 = pnand %p125_p0, %p122_p13 }
  0x3a   :  { %130 = shalt.err (!%p127_p1)
}
  0x3b   :  { %75 = dma.vmem_to_hbm [thread:$0]  %s73_s20, 128, %s174_s1, [#allocation4]  }
  0x3c   :  { %133 = dma.done.wait [#allocation4], 128  }
  0x3d   :  { %134 = vsyncadd [#allocation4], 4294967168 }
  0x3e   :  { %79 = vsyncpa [#allocation3], 1 }
  0x3f   :  { %80 = vsyncpa [#allocation4], 1 }

</bundles_post_ra>
